<compile_context>
chip_gen: v7x
topology: tpu7x:2x2x1
jax: 0.10.0
libtpu: 0.0.40
codegen_flags: <defaults>
</compile_context>

<pallas_src>
import functools

import jax
import jax.numpy as jnp
from jax.experimental import pallas as pl
from jax.experimental.pallas import tpu as pltpu


def _vmem_limit_bytes():
    # v5e/v6e have 128 MiB physical VMEM, v7x has 64 MiB; leave headroom.
    try:
        cap = int(pltpu.get_tpu_info().vmem_capacity_bytes)
    except Exception:
        cap = 64 * 1024 * 1024
    return min(3 * cap // 4, 100 * 1024 * 1024)


def _blur_kernel(pad_ref, taps_ref, out_ref, *, H, W, C, K, per_batch):
    # pad_ref  : VMEM (1, C, H_p, W_p)  reflection-padded image for batch b
    # taps_ref : SMEM (Bk, K*K)         raw blur-kernel taps (Bk = B or 1)
    # out_ref  : VMEM (1, C, H, W)
    W_p = W + K - 1
    bk = pl.program_id(0) if per_batch else 0

    # diff[p, w] = p - w; band_i[p, w] = k[i, p - w] for 0 <= p - w < K, so
    # (row @ band_i)[w] = sum_j row[w + j] * k[i, j].
    p_idx = jax.lax.broadcasted_iota(jnp.int32, (W_p, W), 0)
    w_idx = jax.lax.broadcasted_iota(jnp.int32, (W_p, W), 1)
    diff = p_idx - w_idx

    acc = None
    for i in range(K):                       # vertical taps: unrolled reduction
        band = jnp.zeros((W_p, W), jnp.float32)
        for j in range(K):                   # horizontal taps -> banded matrix
            band = jnp.where(diff == j, taps_ref[bk, i * K + j], band)
        band_bf = band.astype(jnp.bfloat16)

        rows = pad_ref[0, :, pl.ds(i, H), :]            # (C, H, W_p), static i
        rows = rows.reshape(C * H, W_p).astype(jnp.bfloat16)
        prod = jnp.dot(rows, band_bf,
                       preferred_element_type=jnp.float32)        # (C*H, W)
        acc = prod if acc is None else acc + prod

    out_ref[0] = acc.reshape(C, H, W).astype(out_ref.dtype)


def batch_blur(x, kernel, kernel_size):
    """Pallas equivalent of BatchBlur.forward.

    x      : (B, C, H, W) float32
    kernel : (K, K) shared kernel  OR  (B, K, K) per-batch kernels
    """
    B, C, H, W = x.shape
    K = kernel_size

    # ReflectionPad2d: symmetric for odd K; for even K PyTorch pads more on the
    # top/left, i.e. (before=K//2, after=K//2-1).
    if K % 2 == 1:
        pads = (K // 2, K // 2)
    else:
        pads = (K // 2, K // 2 - 1)
    x_pad = jnp.pad(x, ((0, 0), (0, 0), pads, pads), mode="reflect")
    H_p, W_p = x_pad.shape[-2], x_pad.shape[-1]

    per_batch = kernel.ndim == 3
    taps = (kernel if per_batch else kernel[None]).astype(jnp.float32)
    taps = taps.reshape(taps.shape[0], K * K)        # (Bk, K*K), SMEM-friendly 2D

    # TODO(synk): for large H*W images, add H/W tile grid axes with a (K-1)
    # halo (overlapping pl.Element blocks or a manual-DMA inner pipeline), size
    # tiles per chip (bigger on v5e/v6e's 128 MiB VMEM, ~half on v7x), and fold
    # several batch elements into the matmul M dim for small images; the demo
    # shapes fit comfortably in VMEM untiled.
    return pl.pallas_call(
        functools.partial(_blur_kernel, H=H, W=W, C=C, K=K, per_batch=per_batch),
        out_shape=jax.ShapeDtypeStruct((B, C, H, W), x.dtype),
        grid=(B,),
        in_specs=[
            pl.BlockSpec((1, C, H_p, W_p), lambda b: (b, 0, 0, 0)),
            pl.BlockSpec(memory_space=pltpu.MemorySpace.SMEM),
        ],
        out_specs=pl.BlockSpec((1, C, H, W), lambda b: (b, 0, 0, 0)),
        compiler_params=pltpu.CompilerParams(
            dimension_semantics=("parallel",),
            vmem_limit_bytes=_vmem_limit_bytes()),
    )(x_pad, taps)


def _ref_blur(x, kernel, kernel_size):
    """Pure-JAX f32 reference mirroring the PyTorch forward exactly."""
    B, C, H, W = x.shape
    K = kernel_size
    if K % 2 == 1:
        pads = (K // 2, K // 2)
    else:
        pads = (K // 2, K // 2 - 1)
    pad = jnp.pad(x, ((0, 0), (0, 0), pads, pads), mode="reflect")
    if kernel.ndim == 2:
        ker = jnp.broadcast_to(kernel, (B, K, K))
    else:
        ker = kernel
    out = jnp.zeros((B, C, H, W), jnp.float32)
    for i in range(K):
        for j in range(K):
            out = out + pad[:, :, i:i + H, j:j + W] * ker[:, i, j][:, None, None, None]
    return out.astype(x.dtype)


if __name__ == "__main__":
    B, C, H, W = 2, 4, 16, 16
    kernel_size = 5  # BatchBlur(kernel_size=5); default 21 also supported

    key = jax.random.PRNGKey(0)
    kx, kk = jax.random.split(key)
    x = jax.random.normal(kx, (B, C, H, W), dtype=jnp.float32)

    # Deterministic per-batch blur kernels (positive, normalized to sum 1,
    # like the isotropic/anisotropic Gaussian kernels the module is fed).
    raw = jax.random.uniform(kk, (B, kernel_size, kernel_size), dtype=jnp.float32)
    blur_k3 = raw / jnp.sum(raw, axis=(1, 2), keepdims=True)   # (B, K, K) branch
    blur_k2 = blur_k3[0]                                        # (K, K) branch

    # bf16 MXU operands (f32 accumulate) -> ~1e-3-level error vs the f32 ref.
    TOL = 1e-2

    # Per-batch kernel branch (groups = B*C conv in the PyTorch code).
    out3 = batch_blur(x, blur_k3, kernel_size)
    jax.block_until_ready(out3)
    ref3 = _ref_blur(x, blur_k3, kernel_size)
    assert out3.shape == (B, C, H, W)
    assert jnp.allclose(out3, ref3, atol=TOL, rtol=TOL)

    # Shared 2D kernel branch.
    out2 = batch_blur(x, blur_k2, kernel_size)
    jax.block_until_ready(out2)
    ref2 = _ref_blur(x, blur_k2, kernel_size)
    assert jnp.allclose(out2, ref2, atol=TOL, rtol=TOL)

    print("KERNEL_OK")
</pallas_src>

<mosaic_0001>
module attributes {stable_mosaic.version = 11 : i64} {
  func.func @_blur_kernel(%arg0: i32, %arg1: memref<1x4x20x20xf32, #tpu.memory_space<vmem>>, %arg2: memref<2x25xf32, #tpu.memory_space<smem>>, %arg3: memref<1x4x16x16xf32, #tpu.memory_space<vmem>>) attributes {dimension_semantics = [#tpu.dimension_semantics<parallel>], iteration_bounds = array<i64: 2>, scalar_prefetch = 0 : i64, scratch_operands = 0 : i64, tpu.core_type = #tpu.core_type<tc>, window_params = [{transform_indices = @transform_0, window_bounds = array<i64: 1, 4, 20, 20>}, {transform_indices = @transform_1, window_bounds = array<i64: 2, 25>}, {transform_indices = @transform_2, window_bounds = array<i64: 1, 4, 16, 16>}]} {
    %0 = tpu.iota {dimensions = array<i32: 0>} : vector<20x16xi32>
    %1 = tpu.iota {dimensions = array<i32: 1>} : vector<20x16xi32>
    %2 = arith.subi %0, %1 : vector<20x16xi32>
    %cst = arith.constant 0.000000e+00 : f32
    %3 = vector.broadcast %cst : f32 to vector<20x16xf32>
    %c0_i32 = arith.constant 0 : i32
    %4 = vector.broadcast %c0_i32 : i32 to vector<20x16xi32>
    %5 = arith.cmpi eq, %2, %4 : vector<20x16xi32>
    %6 = arith.index_cast %arg0 : i32 to index
    %c0 = arith.constant 0 : index
    %7 = memref.load %arg2[%6, %c0] : memref<2x25xf32, #tpu.memory_space<smem>>
    %8 = vector.broadcast %7 : f32 to vector<20x16xf32>
    %9 = arith.select %5, %8, %3 : vector<20x16xi1>, vector<20x16xf32>
    %c1_i32 = arith.constant 1 : i32
    %10 = vector.broadcast %c1_i32 : i32 to vector<20x16xi32>
    %11 = arith.cmpi eq, %2, %10 : vector<20x16xi32>
    %12 = arith.index_cast %arg0 : i32 to index
    %c1 = arith.constant 1 : index
    %13 = memref.load %arg2[%12, %c1] : memref<2x25xf32, #tpu.memory_space<smem>>
    %14 = vector.broadcast %13 : f32 to vector<20x16xf32>
    %15 = arith.select %11, %14, %9 : vector<20x16xi1>, vector<20x16xf32>
    %c2_i32 = arith.constant 2 : i32
    %16 = vector.broadcast %c2_i32 : i32 to vector<20x16xi32>
    %17 = arith.cmpi eq, %2, %16 : vector<20x16xi32>
    %18 = arith.index_cast %arg0 : i32 to index
    %c2 = arith.constant 2 : index
    %19 = memref.load %arg2[%18, %c2] : memref<2x25xf32, #tpu.memory_space<smem>>
    %20 = vector.broadcast %19 : f32 to vector<20x16xf32>
    %21 = arith.select %17, %20, %15 : vector<20x16xi1>, vector<20x16xf32>
    %c3_i32 = arith.constant 3 : i32
    %22 = vector.broadcast %c3_i32 : i32 to vector<20x16xi32>
    %23 = arith.cmpi eq, %2, %22 : vector<20x16xi32>
    %24 = arith.index_cast %arg0 : i32 to index
    %c3 = arith.constant 3 : index
    %25 = memref.load %arg2[%24, %c3] : memref<2x25xf32, #tpu.memory_space<smem>>
    %26 = vector.broadcast %25 : f32 to vector<20x16xf32>
    %27 = arith.select %23, %26, %21 : vector<20x16xi1>, vector<20x16xf32>
    %c4_i32 = arith.constant 4 : i32
    %28 = vector.broadcast %c4_i32 : i32 to vector<20x16xi32>
    %29 = arith.cmpi eq, %2, %28 : vector<20x16xi32>
    %30 = arith.index_cast %arg0 : i32 to index
    %c4 = arith.constant 4 : index
    %31 = memref.load %arg2[%30, %c4] : memref<2x25xf32, #tpu.memory_space<smem>>
    %32 = vector.broadcast %31 : f32 to vector<20x16xf32>
    %33 = arith.select %29, %32, %27 : vector<20x16xi1>, vector<20x16xf32>
    %34 = arith.truncf %33 : vector<20x16xf32> to vector<20x16xbf16>
    %c0_0 = arith.constant 0 : index
    %c0_1 = arith.constant 0 : index
    %c0_2 = arith.constant 0 : index
    %c0_3 = arith.constant 0 : index
    %35 = vector.load %arg1[%c0_0, %c0_1, %c0_2, %c0_3] : memref<1x4x20x20xf32, #tpu.memory_space<vmem>>, vector<1x4x16x20xf32>
    %36 = vector.shape_cast %35 : vector<1x4x16x20xf32> to vector<4x16x20xf32>
    %37 = vector.shape_cast %36 : vector<4x16x20xf32> to vector<64x20xf32>
    %38 = arith.truncf %37 : vector<64x20xf32> to vector<64x20xbf16>
    %cst_4 = arith.constant dense<0.000000e+00> : vector<64x16xf32>
    %39 = tpu.matmul %38, %34, %cst_4 {dimension_numbers = #tpu.dot_dimension_numbers<[1], [0], [0], [1], [0, 0, 1, 1], [], []>} : vector<64x20xbf16>, vector<20x16xbf16>, vector<64x16xf32> -> vector<64x16xf32>
    %cst_5 = arith.constant 0.000000e+00 : f32
    %40 = vector.broadcast %cst_5 : f32 to vector<20x16xf32>
    %c0_i32_6 = arith.constant 0 : i32
    %41 = vector.broadcast %c0_i32_6 : i32 to vector<20x16xi32>
    %42 = arith.cmpi eq, %2, %41 : vector<20x16xi32>
    %43 = arith.index_cast %arg0 : i32 to index
    %c5 = arith.constant 5 : index
    %44 = memref.load %arg2[%43, %c5] : memref<2x25xf32, #tpu.memory_space<smem>>
    %45 = vector.broadcast %44 : f32 to vector<20x16xf32>
    %46 = arith.select %42, %45, %40 : vector<20x16xi1>, vector<20x16xf32>
    %c1_i32_7 = arith.constant 1 : i32
    %47 = vector.broadcast %c1_i32_7 : i32 to vector<20x16xi32>
    %48 = arith.cmpi eq, %2, %47 : vector<20x16xi32>
    %49 = arith.index_cast %arg0 : i32 to index
    %c6 = arith.constant 6 : index
    %50 = memref.load %arg2[%49, %c6] : memref<2x25xf32, #tpu.memory_space<smem>>
    %51 = vector.broadcast %50 : f32 to vector<20x16xf32>
    %52 = arith.select %48, %51, %46 : vector<20x16xi1>, vector<20x16xf32>
    %c2_i32_8 = arith.constant 2 : i32
    %53 = vector.broadcast %c2_i32_8 : i32 to vector<20x16xi32>
    %54 = arith.cmpi eq, %2, %53 : vector<20x16xi32>
    %55 = arith.index_cast %arg0 : i32 to index
    %c7 = arith.constant 7 : index
    %56 = memref.load %arg2[%55, %c7] : memref<2x25xf32, #tpu.memory_space<smem>>
    %57 = vector.broadcast %56 : f32 to vector<20x16xf32>
    %58 = arith.select %54, %57, %52 : vector<20x16xi1>, vector<20x16xf32>
    %c3_i32_9 = arith.constant 3 : i32
    %59 = vector.broadcast %c3_i32_9 : i32 to vector<20x16xi32>
    %60 = arith.cmpi eq, %2, %59 : vector<20x16xi32>
    %61 = arith.index_cast %arg0 : i32 to index
    %c8 = arith.constant 8 : index
    %62 = memref.load %arg2[%61, %c8] : memref<2x25xf32, #tpu.memory_space<smem>>
    %63 = vector.broadcast %62 : f32 to vector<20x16xf32>
    %64 = arith.select %60, %63, %58 : vector<20x16xi1>, vector<20x16xf32>
    %c4_i32_10 = arith.constant 4 : i32
    %65 = vector.broadcast %c4_i32_10 : i32 to vector<20x16xi32>
    %66 = arith.cmpi eq, %2, %65 : vector<20x16xi32>
    %67 = arith.index_cast %arg0 : i32 to index
    %c9 = arith.constant 9 : index
    %68 = memref.load %arg2[%67, %c9] : memref<2x25xf32, #tpu.memory_space<smem>>
    %69 = vector.broadcast %68 : f32 to vector<20x16xf32>
    %70 = arith.select %66, %69, %64 : vector<20x16xi1>, vector<20x16xf32>
    %71 = arith.truncf %70 : vector<20x16xf32> to vector<20x16xbf16>
    %c0_11 = arith.constant 0 : index
    %c0_12 = arith.constant 0 : index
    %c1_13 = arith.constant 1 : index
    %c0_14 = arith.constant 0 : index
    %72 = vector.load %arg1[%c0_11, %c0_12, %c1_13, %c0_14] : memref<1x4x20x20xf32, #tpu.memory_space<vmem>>, vector<1x4x16x20xf32>
    %73 = vector.shape_cast %72 : vector<1x4x16x20xf32> to vector<4x16x20xf32>
    %74 = vector.shape_cast %73 : vector<4x16x20xf32> to vector<64x20xf32>
    %75 = arith.truncf %74 : vector<64x20xf32> to vector<64x20xbf16>
    %cst_15 = arith.constant dense<0.000000e+00> : vector<64x16xf32>
    %76 = tpu.matmul %75, %71, %cst_15 {dimension_numbers = #tpu.dot_dimension_numbers<[1], [0], [0], [1], [0, 0, 1, 1], [], []>} : vector<64x20xbf16>, vector<20x16xbf16>, vector<64x16xf32> -> vector<64x16xf32>
    %77 = arith.addf %39, %76 : vector<64x16xf32>
    %cst_16 = arith.constant 0.000000e+00 : f32
    %78 = vector.broadcast %cst_16 : f32 to vector<20x16xf32>
    %c0_i32_17 = arith.constant 0 : i32
    %79 = vector.broadcast %c0_i32_17 : i32 to vector<20x16xi32>
    %80 = arith.cmpi eq, %2, %79 : vector<20x16xi32>
    %81 = arith.index_cast %arg0 : i32 to index
    %c10 = arith.constant 10 : index
    %82 = memref.load %arg2[%81, %c10] : memref<2x25xf32, #tpu.memory_space<smem>>
    %83 = vector.broadcast %82 : f32 to vector<20x16xf32>
    %84 = arith.select %80, %83, %78 : vector<20x16xi1>, vector<20x16xf32>
    %c1_i32_18 = arith.constant 1 : i32
    %85 = vector.broadcast %c1_i32_18 : i32 to vector<20x16xi32>
    %86 = arith.cmpi eq, %2, %85 : vector<20x16xi32>
    %87 = arith.index_cast %arg0 : i32 to index
    %c11 = arith.constant 11 : index
    %88 = memref.load %arg2[%87, %c11] : memref<2x25xf32, #tpu.memory_space<smem>>
    %89 = vector.broadcast %88 : f32 to vector<20x16xf32>
    %90 = arith.select %86, %89, %84 : vector<20x16xi1>, vector<20x16xf32>
    %c2_i32_19 = arith.constant 2 : i32
    %91 = vector.broadcast %c2_i32_19 : i32 to vector<20x16xi32>
    %92 = arith.cmpi eq, %2, %91 : vector<20x16xi32>
    %93 = arith.index_cast %arg0 : i32 to index
    %c12 = arith.constant 12 : index
    %94 = memref.load %arg2[%93, %c12] : memref<2x25xf32, #tpu.memory_space<smem>>
    %95 = vector.broadcast %94 : f32 to vector<20x16xf32>
    %96 = arith.select %92, %95, %90 : vector<20x16xi1>, vector<20x16xf32>
    %c3_i32_20 = arith.constant 3 : i32
    %97 = vector.broadcast %c3_i32_20 : i32 to vector<20x16xi32>
    %98 = arith.cmpi eq, %2, %97 : vector<20x16xi32>
    %99 = arith.index_cast %arg0 : i32 to index
    %c13 = arith.constant 13 : index
    %100 = memref.load %arg2[%99, %c13] : memref<2x25xf32, #tpu.memory_space<smem>>
    %101 = vector.broadcast %100 : f32 to vector<20x16xf32>
    %102 = arith.select %98, %101, %96 : vector<20x16xi1>, vector<20x16xf32>
    %c4_i32_21 = arith.constant 4 : i32
    %103 = vector.broadcast %c4_i32_21 : i32 to vector<20x16xi32>
    %104 = arith.cmpi eq, %2, %103 : vector<20x16xi32>
    %105 = arith.index_cast %arg0 : i32 to index
    %c14 = arith.constant 14 : index
    %106 = memref.load %arg2[%105, %c14] : memref<2x25xf32, #tpu.memory_space<smem>>
    %107 = vector.broadcast %106 : f32 to vector<20x16xf32>
    %108 = arith.select %104, %107, %102 : vector<20x16xi1>, vector<20x16xf32>
    %109 = arith.truncf %108 : vector<20x16xf32> to vector<20x16xbf16>
    %c0_22 = arith.constant 0 : index
    %c0_23 = arith.constant 0 : index
    %c2_24 = arith.constant 2 : index
    %c0_25 = arith.constant 0 : index
    %110 = vector.load %arg1[%c0_22, %c0_23, %c2_24, %c0_25] : memref<1x4x20x20xf32, #tpu.memory_space<vmem>>, vector<1x4x16x20xf32>
    %111 = vector.shape_cast %110 : vector<1x4x16x20xf32> to vector<4x16x20xf32>
    %112 = vector.shape_cast %111 : vector<4x16x20xf32> to vector<64x20xf32>
    %113 = arith.truncf %112 : vector<64x20xf32> to vector<64x20xbf16>
    %cst_26 = arith.constant dense<0.000000e+00> : vector<64x16xf32>
    %114 = tpu.matmul %113, %109, %cst_26 {dimension_numbers = #tpu.dot_dimension_numbers<[1], [0], [0], [1], [0, 0, 1, 1], [], []>} : vector<64x20xbf16>, vector<20x16xbf16>, vector<64x16xf32> -> vector<64x16xf32>
    %115 = arith.addf %77, %114 : vector<64x16xf32>
    %cst_27 = arith.constant 0.000000e+00 : f32
    %116 = vector.broadcast %cst_27 : f32 to vector<20x16xf32>
    %c0_i32_28 = arith.constant 0 : i32
    %117 = vector.broadcast %c0_i32_28 : i32 to vector<20x16xi32>
    %118 = arith.cmpi eq, %2, %117 : vector<20x16xi32>
    %119 = arith.index_cast %arg0 : i32 to index
    %c15 = arith.constant 15 : index
    %120 = memref.load %arg2[%119, %c15] : memref<2x25xf32, #tpu.memory_space<smem>>
    %121 = vector.broadcast %120 : f32 to vector<20x16xf32>
    %122 = arith.select %118, %121, %116 : vector<20x16xi1>, vector<20x16xf32>
    %c1_i32_29 = arith.constant 1 : i32
    %123 = vector.broadcast %c1_i32_29 : i32 to vector<20x16xi32>
    %124 = arith.cmpi eq, %2, %123 : vector<20x16xi32>
    %125 = arith.index_cast %arg0 : i32 to index
    %c16 = arith.constant 16 : index
    %126 = memref.load %arg2[%125, %c16] : memref<2x25xf32, #tpu.memory_space<smem>>
    %127 = vector.broadcast %126 : f32 to vector<20x16xf32>
    %128 = arith.select %124, %127, %122 : vector<20x16xi1>, vector<20x16xf32>
    %c2_i32_30 = arith.constant 2 : i32
    %129 = vector.broadcast %c2_i32_30 : i32 to vector<20x16xi32>
    %130 = arith.cmpi eq, %2, %129 : vector<20x16xi32>
    %131 = arith.index_cast %arg0 : i32 to index
    %c17 = arith.constant 17 : index
    %132 = memref.load %arg2[%131, %c17] : memref<2x25xf32, #tpu.memory_space<smem>>
    %133 = vector.broadcast %132 : f32 to vector<20x16xf32>
    %134 = arith.select %130, %133, %128 : vector<20x16xi1>, vector<20x16xf32>
    %c3_i32_31 = arith.constant 3 : i32
    %135 = vector.broadcast %c3_i32_31 : i32 to vector<20x16xi32>
    %136 = arith.cmpi eq, %2, %135 : vector<20x16xi32>
    %137 = arith.index_cast %arg0 : i32 to index
    %c18 = arith.constant 18 : index
    %138 = memref.load %arg2[%137, %c18] : memref<2x25xf32, #tpu.memory_space<smem>>
    %139 = vector.broadcast %138 : f32 to vector<20x16xf32>
    %140 = arith.select %136, %139, %134 : vector<20x16xi1>, vector<20x16xf32>
    %c4_i32_32 = arith.constant 4 : i32
    %141 = vector.broadcast %c4_i32_32 : i32 to vector<20x16xi32>
    %142 = arith.cmpi eq, %2, %141 : vector<20x16xi32>
    %143 = arith.index_cast %arg0 : i32 to index
    %c19 = arith.constant 19 : index
    %144 = memref.load %arg2[%143, %c19] : memref<2x25xf32, #tpu.memory_space<smem>>
    %145 = vector.broadcast %144 : f32 to vector<20x16xf32>
    %146 = arith.select %142, %145, %140 : vector<20x16xi1>, vector<20x16xf32>
    %147 = arith.truncf %146 : vector<20x16xf32> to vector<20x16xbf16>
    %c0_33 = arith.constant 0 : index
    %c0_34 = arith.constant 0 : index
    %c3_35 = arith.constant 3 : index
    %c0_36 = arith.constant 0 : index
    %148 = vector.load %arg1[%c0_33, %c0_34, %c3_35, %c0_36] : memref<1x4x20x20xf32, #tpu.memory_space<vmem>>, vector<1x4x16x20xf32>
    %149 = vector.shape_cast %148 : vector<1x4x16x20xf32> to vector<4x16x20xf32>
    %150 = vector.shape_cast %149 : vector<4x16x20xf32> to vector<64x20xf32>
    %151 = arith.truncf %150 : vector<64x20xf32> to vector<64x20xbf16>
    %cst_37 = arith.constant dense<0.000000e+00> : vector<64x16xf32>
    %152 = tpu.matmul %151, %147, %cst_37 {dimension_numbers = #tpu.dot_dimension_numbers<[1], [0], [0], [1], [0, 0, 1, 1], [], []>} : vector<64x20xbf16>, vector<20x16xbf16>, vector<64x16xf32> -> vector<64x16xf32>
    %153 = arith.addf %115, %152 : vector<64x16xf32>
    %cst_38 = arith.constant 0.000000e+00 : f32
    %154 = vector.broadcast %cst_38 : f32 to vector<20x16xf32>
    %c0_i32_39 = arith.constant 0 : i32
    %155 = vector.broadcast %c0_i32_39 : i32 to vector<20x16xi32>
    %156 = arith.cmpi eq, %2, %155 : vector<20x16xi32>
    %157 = arith.index_cast %arg0 : i32 to index
    %c20 = arith.constant 20 : index
    %158 = memref.load %arg2[%157, %c20] : memref<2x25xf32, #tpu.memory_space<smem>>
    %159 = vector.broadcast %158 : f32 to vector<20x16xf32>
    %160 = arith.select %156, %159, %154 : vector<20x16xi1>, vector<20x16xf32>
    %c1_i32_40 = arith.constant 1 : i32
    %161 = vector.broadcast %c1_i32_40 : i32 to vector<20x16xi32>
    %162 = arith.cmpi eq, %2, %161 : vector<20x16xi32>
    %163 = arith.index_cast %arg0 : i32 to index
    %c21 = arith.constant 21 : index
    %164 = memref.load %arg2[%163, %c21] : memref<2x25xf32, #tpu.memory_space<smem>>
    %165 = vector.broadcast %164 : f32 to vector<20x16xf32>
    %166 = arith.select %162, %165, %160 : vector<20x16xi1>, vector<20x16xf32>
    %c2_i32_41 = arith.constant 2 : i32
    %167 = vector.broadcast %c2_i32_41 : i32 to vector<20x16xi32>
    %168 = arith.cmpi eq, %2, %167 : vector<20x16xi32>
    %169 = arith.index_cast %arg0 : i32 to index
    %c22 = arith.constant 22 : index
    %170 = memref.load %arg2[%169, %c22] : memref<2x25xf32, #tpu.memory_space<smem>>
    %171 = vector.broadcast %170 : f32 to vector<20x16xf32>
    %172 = arith.select %168, %171, %166 : vector<20x16xi1>, vector<20x16xf32>
    %c3_i32_42 = arith.constant 3 : i32
    %173 = vector.broadcast %c3_i32_42 : i32 to vector<20x16xi32>
    %174 = arith.cmpi eq, %2, %173 : vector<20x16xi32>
    %175 = arith.index_cast %arg0 : i32 to index
    %c23 = arith.constant 23 : index
    %176 = memref.load %arg2[%175, %c23] : memref<2x25xf32, #tpu.memory_space<smem>>
    %177 = vector.broadcast %176 : f32 to vector<20x16xf32>
    %178 = arith.select %174, %177, %172 : vector<20x16xi1>, vector<20x16xf32>
    %c4_i32_43 = arith.constant 4 : i32
    %179 = vector.broadcast %c4_i32_43 : i32 to vector<20x16xi32>
    %180 = arith.cmpi eq, %2, %179 : vector<20x16xi32>
    %181 = arith.index_cast %arg0 : i32 to index
    %c24 = arith.constant 24 : index
    %182 = memref.load %arg2[%181, %c24] : memref<2x25xf32, #tpu.memory_space<smem>>
    %183 = vector.broadcast %182 : f32 to vector<20x16xf32>
    %184 = arith.select %180, %183, %178 : vector<20x16xi1>, vector<20x16xf32>
    %185 = arith.truncf %184 : vector<20x16xf32> to vector<20x16xbf16>
    %c0_44 = arith.constant 0 : index
    %c0_45 = arith.constant 0 : index
    %c4_46 = arith.constant 4 : index
    %c0_47 = arith.constant 0 : index
    %186 = vector.load %arg1[%c0_44, %c0_45, %c4_46, %c0_47] : memref<1x4x20x20xf32, #tpu.memory_space<vmem>>, vector<1x4x16x20xf32>
    %187 = vector.shape_cast %186 : vector<1x4x16x20xf32> to vector<4x16x20xf32>
    %188 = vector.shape_cast %187 : vector<4x16x20xf32> to vector<64x20xf32>
    %189 = arith.truncf %188 : vector<64x20xf32> to vector<64x20xbf16>
    %cst_48 = arith.constant dense<0.000000e+00> : vector<64x16xf32>
    %190 = tpu.matmul %189, %185, %cst_48 {dimension_numbers = #tpu.dot_dimension_numbers<[1], [0], [0], [1], [0, 0, 1, 1], [], []>} : vector<64x20xbf16>, vector<20x16xbf16>, vector<64x16xf32> -> vector<64x16xf32>
    %191 = arith.addf %153, %190 : vector<64x16xf32>
    %192 = vector.shape_cast %191 : vector<64x16xf32> to vector<4x16x16xf32>
    %c0_49 = arith.constant 0 : index
    %c0_50 = arith.constant 0 : index
    %c0_51 = arith.constant 0 : index
    %c0_52 = arith.constant 0 : index
    %193 = vector.load %arg3[%c0_49, %c0_50, %c0_51, %c0_52] : memref<1x4x16x16xf32, #tpu.memory_space<vmem>>, vector<1x4x16x16xf32>
    %194 = vector.shape_cast %193 : vector<1x4x16x16xf32> to vector<4x16x16xf32>
    %195 = vector.shape_cast %192 : vector<4x16x16xf32> to vector<1x4x16x16xf32>
    tpu.vector_store %arg3[%c0_49, %c0_50, %c0_51, %c0_52], %195 {strides = array<i32>} : memref<1x4x16x16xf32, #tpu.memory_space<vmem>>, vector<1x4x16x16xf32>,
    return
  }
  func.func @transform_0(%arg0: i32) -> (i32, i32, i32, i32) {
    %c0_i32 = arith.constant 0 : i32
    %c0_i32_0 = arith.constant 0 : i32
    %c0_i32_1 = arith.constant 0 : i32
    %c0_i32_2 = arith.constant 0 : i32
    return %arg0, %c0_i32, %c0_i32_0, %c0_i32_1 : i32, i32, i32, i32
  }
  func.func @transform_1(%arg0: i32) -> (i32, i32) {
    %c0_i32 = arith.constant 0 : i32
    %c0_i32_0 = arith.constant 0 : i32
    %c0_i32_1 = arith.constant 0 : i32
    return %c0_i32, %c0_i32_0 : i32, i32
  }
  func.func @transform_2(%arg0: i32) -> (i32, i32, i32, i32) {
    %c0_i32 = arith.constant 0 : i32
    %c0_i32_0 = arith.constant 0 : i32
    %c0_i32_1 = arith.constant 0 : i32
    %c0_i32_2 = arith.constant 0 : i32
    return %arg0, %c0_i32, %c0_i32_0, %c0_i32_1 : i32, i32, i32, i32
  }
}

</mosaic_0001>

<bundles_post_ra>
// kernel: tpu_custom_call.1
= control target key start
LH: loop header
LB: loop body
LE: loop exit
PB: predicated region body
PF: predicated region fallthrough
CT: control target
= control target key end

     0   :  { %7 = vsyncpa [#allocation4], 0  ;;  %s1780_s0 = inlined_call_operand.vmem [shape: f32[2,4,20,20], index: 0, kind: input, shape index: {}]   ;;  %s1781_s1 = inlined_call_operand.vmem [shape: f32[2,25], index: 1, kind: input, shape index: {}]   ;;  %s1782_s2 = inlined_call_operand.hbm [shape: f32[2,4,16,16], index: 2, kind: output, shape index: {}]  }
   0x1   :  { %8 = vsyncpa [#allocation3], 0 }
   0x2   :  { %10 = vsyncpa [#allocation3 + $0x1], 0  ;;  %s1246_s9 = smov 0   ;;  %s1248_s10 = smov 0  }
   0x3   :  { %s1250_s11 = smov 0   ;;  %s1252_s12 = smov 0  }
   0x4 LB: > { %s1267_s13 = sadd.s32 4294967295, %s1225_s12   ;;  %s924_s14 = sadd.s32 4294967294, %s1225_s12   ;;  %s1225_s12 = sphi %s1252_s12, %s1810_s12   ;;  %s1221_s11 = sphi %s1250_s11, %s1809_s11   ;;  %s1217_s10 = sphi %s1248_s10, %s1808_s10   ;;  %s1213_s9 = sphi %s1246_s9, %s1807_s9  }
   0x5   : > { %s1271_s15 = sadd.s32 1, %s1225_s12   ;;  %s70_s16 = sadd.s32 1, %s1221_s11 }
   0x6   : > { %s67_s17 = ssub.s32 %s1225_s12, %s1271_s15  ;;  %p80_p0 = scmp.ne.s32.totalorder %s1221_s11, %s1217_s10 }
   0x7   : > { %p68_p1 = scmp.eq.s32.totalorder %s67_s17, 0  ;;  %p81_p2 = scmp.eq.s32.totalorder %s1267_s13, 1 }
   0x8   : > { %p86_p3 = scmp.ne.s32.totalorder %s1217_s10, %s1213_s9  ;;  %p87_p4 = scmp.eq.s32.totalorder %s924_s14, 1 }
   0x9   : > { %s1282_s18 = scalar_select %p68_p1, %s1221_s11, %s70_s16  }
   0xa   : > { %p1284_p5 = por %p81_p2, %p80_p0  ;;  %p1288_p6 = por %p87_p4, %p86_p3 }
   0xb   : > { %p925_p7 = scmp.ge.s32.totalorder %s1225_s12, 1  ;;  %p94_p8 = scmp.lt.s32.totalorder %s1225_s12, 3 }
   0xc   : > { %p1106_p9 = scmp.eq.s32.totalorder %s1267_s13, 0  ;;  %s107_s24 = sshll.u32 %s1781_s1, 4  ;;  %s108_s24 = int_to_ptr.vmem [resolvable:$true] %s107_s24 }
   0xd   : > { %p1295_p10 = pnand %p925_p7, %p94_p8  ;;  %s1144_s25 = scalar_lea.vmem %s108_s24, 32 }
   0xe   : > { %p1145_p13 = scmp.ne.s32.totalorder %s108_s24, %s1144_s25  ;;  %p1152_p3 = scmp.lt.s32.totalorder %s108_s24, %s108_s24 }
   0xf   : > { %p1098_p11 = pneg %p1295_p10  ;;  %p1153_p4 = scmp.lt.s32.totalorder %s1144_s25, %s1144_s25 }
  0x11   : > { %p1099_p12 = pnand %p1106_p9, %p1098_p11  ;;  %p1154_p7 = por %p1153_p4, %p1152_p3 }
  0x13   : > { %p1146_p0 = pneg %p1099_p12 }
  0x15   : > { %p1147_p1 = pnand %p1146_p0, %p1145_p13 }
  0x17   : > { %p1148_p2 = pneg %p1147_p1 }
  0x19   : > { %p1155_p8 = pnand %p1154_p7, %p1148_p2 }
  0x1b   : > { %1158 = shalt.err (!%p1155_p8)
}
  0x1c   : > { %s1227_s26 = smov [#allocation2]   ;;  %128 = sbr.rel (%p1295_p10) target bundleno = 337 (0x151), region = 28 }
  0x1d   : > { %1101 = dma.vmem_to_smem (!%p1099_p12), %s108_s24, 32, %s1227_s26, [#allocation4]  }
  0x23   : > { %1204 = dma.done.wait (%p1106_p9), [#allocation4], 32  }
  0x24   : > { %1206 = vsyncadd (%p1106_p9), [#allocation4], 4294967264 }
  0x25   : > { %134 = sfence }
  0x26   : > { %v157_v0 = vlaneseq  ;;  %s1313_s27 = sshll.u32 %s1267_s13, 7  ;;  %p151_p11 = scmp.lt.s32.totalorder %s1267_s13, 1  ;;  %vm269_vm9 = vcmask 162816  }
  0x27   : > { %s225_s28 = sadd.s32 5, %s1313_s27  ;;  %s231_s29 = sadd.s32 6, %s1313_s27 }
  0x28   : > { %v158_v1 = vshrl.u32 %v157_v0, 7  ;;  %v162_v2 = vand.u32 127, %v157_v0  ;;  %s1318_s30 = sld [smem:[#allocation2 + %s225_s28]]  ;;  %s237_s4 = sadd.s32 7, %s1313_s27 }
  0x29   : > { %s1320_s3 = sld [smem:[#allocation2 + %s231_s29]]  ;;  %s243_s5 = sadd.s32 8, %s1313_s27 }
  0x2a   : > { %v159_v3 = vadd.s32 8, %v158_v1  ;;  %v160_v4 = vadd.s32 16, %v158_v1  ;;  %v1324_v5 = vsub.s32 %v158_v1, %v162_v2  ;;  %s1326_s6 = sld [smem:[#allocation2 + %s237_s4]]  ;;  %s249_s8 = sadd.s32 9, %s1313_s27 }
  0x2b   : > { %s1328_s7 = sld [smem:[#allocation2 + %s243_s5]]  ;;  %s431_s14 = sadd.s32 10, %s1313_s27 }
  0x2c   : > { %v1332_v6 = vsub.s32 %v159_v3, %v162_v2  ;;  %v1334_v7 = vsub.s32 %v160_v4, %v162_v2  ;;  %vm166_vm0 = vcmp.eq.s32.totalorder %v1324_v5, 0  ;;  %s1337_s16 = sld [smem:[#allocation2 + %s249_s8]]  ;;  %vm175_vm1 = vcmp.eq.s32.totalorder %v1324_v5, 1  ;;  %s437_s21 = sadd.s32 11, %s1313_s27 }
  0x2d   : > { %s1339_s17 = sld [smem:[#allocation2 + %s431_s14]]  ;;  %vm184_vm2 = vcmp.eq.s32.totalorder %v1324_v5, 2  ;;  %vm193_vm3 = vcmp.eq.s32.totalorder %v1324_v5, 3  ;;  %vm202_vm4 = vcmp.eq.s32.totalorder %v1324_v5, 4  ;;  %s443_s22 = sadd.s32 12, %s1313_s27 }
  0x2e   : > { %vm167_vm5 = vcmp.eq.s32.totalorder %v1332_v6, 0  ;;  %vm1784_vm6 = vcmp.eq.s32.totalorder %v1334_v7, 0  ;;  %vm176_vm7 = vcmp.eq.s32.totalorder %v1332_v6, 1  ;;  %vm177_vm8 = vcmp.eq.s32.totalorder %v1334_v7, 1  ;;  %s1351_s23 = sld [smem:[#allocation2 + %s437_s21]]  ;;  %s449_s25 = sadd.s32 13, %s1313_s27 }
  0x2f   : > { %s1353_s24 = sld [smem:[#allocation2 + %s443_s22]]  ;;  %vm1783_vm10 = vcmp.eq.s32.totalorder %v1332_v6, 2  ;;  %vm186_vm11 = vcmp.eq.s32.totalorder %v1334_v7, 2  ;;  %vm194_vm12 = vcmp.eq.s32.totalorder %v1332_v6, 3  ;;  %vm195_vm13 = vcmp.eq.s32.totalorder %v1334_v7, 3  ;;  %s455_s26 = sadd.s32 14, %s1313_s27 }
  0x30   : > { %vm203_vm14 = vcmp.eq.s32.totalorder %v1332_v6, 4  ;;  %vm1785_vm15 = vcmp.eq.s32.totalorder %v1334_v7, 4  ;;  %v227_v8 = vstv %s1318_s30  ;;  %v233_v9 = vstv %s1320_s3  ;;  %s1365_s28 = sld [smem:[#allocation2 + %s449_s25]]  ;;  %s178_s3 = sadd.s32 1, %s1313_s27 }
  0x31   : > { %s1367_s29 = sld [smem:[#allocation2 + %s455_s26]]  ;;  %v228_v10 = vsel %vm166_vm0, %v227_v8, 0.0  ;;  %v229_v11 = vsel %vm167_vm5, %v227_v8, 0.0  ;;  %v230_v12 = vsel %vm1784_vm6, %v227_v8, 0.0  ;;  %v239_v13 = vstv %s1326_s6  ;;  %s196_s8 = sadd.s32 3, %s1313_s27 }
  0x32   : > { %s152_s4 = scalar_select %p151_p11, %s1267_s13, 1  ;;  %v234_v14 = vsel %vm175_vm1, %v233_v9, %v228_v10  ;;  %v235_v15 = vsel %vm176_vm7, %v233_v9, %v229_v11  ;;  %v236_v16 = vsel %vm177_vm8, %v233_v9, %v230_v12  ;;  %v245_v17 = vstv %s1328_s7 }
  0x33   : > { %s1387_s30 = sld [smem:[#allocation2 + %s1313_s27]]  ;;  %v240_v18 = vsel %vm184_vm2, %v239_v13, %v234_v14  ;;  %v241_v19 = vsel %vm1783_vm10, %v239_v13, %v235_v15  ;;  %v242_v20 = vsel %vm186_vm11, %v239_v13, %v236_v16  ;;  %v251_v21 = vstv %s1337_s16  ;;  %s187_s7 = sadd.s32 2, %s1313_s27 }
  0x34   : > { %s1091_s5 = smul.u32 96, %s152_s4  ;;  %s1397_s6 = sld [smem:[#allocation2 + %s178_s3]]  ;;  %v246_v22 = vsel %vm193_vm3, %v245_v17, %v240_v18  ;;  %v247_v23 = vsel %vm194_vm12, %v245_v17, %v241_v19  ;;  %v248_v24 = vsel %vm195_vm13, %v245_v17, %v242_v20  ;;  %v433_v25 = vstv %s1339_s17 }
  0x35   : > { %v252_v26 = vsel %vm202_vm4, %v251_v21, %v246_v22  ;;  %v253_v27 = vsel %vm203_vm14, %v251_v21, %v247_v23  ;;  %v254_v28 = vsel %vm1785_vm15, %v251_v21, %v248_v24  ;;  %v434_v29 = vsel %vm166_vm0, %v433_v25, 0.0  ;;  %s1421_s21 = sld [smem:[#allocation2 + %s187_s7]]  ;;  %s205_s25 = sadd.s32 4, %s1313_s27 }
  0x36   : > { %s1419_s17 = scalar_lea.vmem %s1780_s0, %s1091_s5  ;;  %v255_v30 = vpack.c.bf16 %v253_v27, %v252_v26  ;;  %v256_v31 = vpack.c.bf16 %v254_v28, %v254_v28  ;;  %v435_v32 = vsel %vm167_vm5, %v433_v25, 0.0  ;;  %v439_v33 = vstv %s1351_s23  ;;  %s1427_s22 = sld [smem:[#allocation2 + %s196_s8]] }
  0x37   : > { %v257_v34 = vld [vmem:[%s1419_s17 + $0x1] sm:$0xff]  ;;  %v440_v35 = vsel %vm175_vm1, %v439_v33, %v434_v29  ;;  %v441_v36 = vsel %vm176_vm7, %v439_v33, %v435_v32  ;;  %v445_v37 = vstv %s1353_s24  ;;  %v451_v38 = vstv %s1365_s28  ;;  %v258_v39 = vld [vmem:[%s1419_s17 + $0x9] sm:$0xff]  ;;  %s1438_s26 = sld [smem:[#allocation2 + %s205_s25]]  ;;  %s563_s23 = sadd.s32 15, %s1313_s27 }
  0x38   : > { %v463_v40 = vld [vmem:[%s1419_s17 + $0x2] sm:$0xff]  ;;  %989 = vmatprep.subr.bf16.mxu1 %v255_v30  ;;  %v446_v41 = vsel %vm184_vm2, %v445_v37, %v440_v35  ;;  %v447_v42 = vsel %vm1783_vm10, %v445_v37, %v441_v36  ;;  %v457_v43 = vstv %s1367_s29  ;;  %v436_v44 = vsel %vm1784_vm6, %v433_v25, 0.0  ;;  %v464_v45 = vld [vmem:[%s1419_s17 + $0xa] sm:$0xff]  ;;  %v259_v46 = vld [vmem:[%s1419_s17 + $0x19] sm:$0xff]  ;;  %s1451_s24 = sld [smem:[#allocation2 + %s563_s23]]  ;;  %s569_s28 = sadd.s32 16, %s1313_s27 }
  0x39   : > { %v260_v47 = vld [vmem:[%s1419_s17 + $0x21] sm:$0xff]  ;;  %v452_v48 = vsel %vm193_vm3, %v451_v38, %v446_v41  ;;  %v453_v49 = vsel %vm194_vm12, %v451_v38, %v447_v42  ;;  %990 = vmatpush3.bf16.msra.mxu1 %v255_v30  ;;  %v442_v50 = vsel %vm177_vm8, %v439_v33, %v436_v44  ;;  %vm1789_vm10 = vcmask 1041408   ;;  %s1461_s29 = sld [smem:[#allocation2 + %s569_s28]]  ;;  %s575_s4 = sadd.s32 17, %s1313_s27  ;;  %v261_v25 = vld [vmem:[%s1419_s17 + $0x31] sm:$0xff]  ;;  %v262_v26 = vld [vmem:[%s1419_s17 + $0x39] sm:$0xff] }
  0x3a   : > { %v284_v51 = vsel %vm1789_vm10, %v256_v31, 0  ;;  %v458_v52 = vsel %vm202_vm4, %v457_v43, %v452_v48  ;;  %v459_v53 = vsel %vm203_vm14, %v457_v43, %v453_v49  ;;  %vm1790_vm6 = vmmov %vm1789_vm10  ;;  %v448_v54 = vsel %vm186_vm11, %v445_v37, %v442_v50  ;;  %s1471_s3 = sld [smem:[#allocation2 + %s575_s4]]  ;;  %s581_s5 = sadd.s32 18, %s1313_s27  ;;  %v1479_v60 = vld [vmem:[%s1419_s17 + $0x1a] sm:$0xff]  ;;  %v1482_v61 = vld [vmem:[%s1419_s17 + $0x22] sm:$0xff] }
  0x3b   : > { %1085 = vmatprep.subr.msk.bf16.mxu1 %vm1790_vm6, %v256_v31  ;;  %v265_v55 = vpack.c.bf16 %v258_v39, %v257_v34  ;;  %v1474_v56 = vpack.c.bf16 %v459_v53, %v458_v52  ;;  %v454_v57 = vsel %vm195_vm13, %v451_v38, %v448_v54  ;;  %v471_v58 = vpack.c.bf16 %v464_v45, %v463_v40  ;;  %s1484_s7 = sld [smem:[#allocation2 + %s581_s5]]  ;;  %s587_s8 = sadd.s32 19, %s1313_s27  ;;  %vm1791_vm10 = vmmov %vm1790_vm6  ;;  %v263_v35 = vld [vmem:[%s1419_s17 + $0x49] sm:$0xff]  ;;  %v264_v36 = vld [vmem:[%s1419_s17 + $0x51] sm:$0xff] }
  0x3c   : > { %v266_v59 = vpack.c.bf16 %v260_v47, %v259_v46  ;;  %v460_v62 = vsel %vm1785_vm15, %v457_v43, %v454_v57  ;;  %v1491_v63 = vstv %s1387_s30  ;;  %v1494_v0 = vstv %s1397_s6  ;;  %s1499_s14 = sld [smem:[#allocation2 + %s587_s8]]  ;;  %s695_s16 = sadd.s32 20, %s1313_s27  ;;  %v595_v37 = vld [vmem:[%s1419_s17 + $0x3] sm:$0xff]  ;;  %v596_v42 = vld [vmem:[%s1419_s17 + $0xb] sm:$0xff] }
  0x3d   : > { %993 = vmatprep.mubr.msk.bf16.mxu1 %vm269_vm9, %v265_v55  ;;  %v1497_v1 = vstv %s1421_s21  ;;  %1013 = vmatprep.subr.bf16.mxu0 %v1474_v56  ;;  %v1503_v2 = vpack.c.bf16 %v460_v62, %v460_v62  ;;  %v172_v3 = vsel %vm166_vm0, %v1491_v63, 0.0  ;;  %v173_v4 = vsel %vm167_vm5, %v1491_v63, 0.0  ;;  %s701_s30 = sadd.s32 21, %s1313_s27  ;;  %s707_s6 = sadd.s32 22, %s1313_s27  ;;  %v1599_v43 = vld [vmem:[%s1419_s17 + $0x1b] sm:$0xff]  ;;  %v1602_v44 = vld [vmem:[%s1419_s17 + $0x23] sm:$0xff] }
  0x3e   : > { %992 = vmatpush3.bf16.msra.mxu1 %v284_v51  ;;  %v1512_v8 = vstv %s1427_s22  ;;  %1014 = vmatpush3.bf16.msra.mxu0 %v1474_v56  ;;  %v181_v9 = vsel %vm175_vm1, %v1494_v0, %v172_v3  ;;  %v182_v10 = vsel %vm176_vm7, %v1494_v0, %v173_v4  ;;  %v1524_v11 = vstv %s1438_s26  ;;  %s1542_s21 = sld [smem:[#allocation2 + %s695_s16]]  ;;  %s713_s25 = sadd.s32 23, %s1313_s27  ;;  %v213_v3 = vld [vmem:[%s1419_s17] sm:$0xff]  ;;  %v214_v4 = vld [vmem:[%s1419_s17 + $0x8] sm:$0xff] }
  0x3f   : > { %1017 = vmatprep.mubr.msk.bf16.mxu0 %vm269_vm9, %v471_v58  ;;  %v472_v12 = vpack.c.bf16 %v1482_v61, %v1479_v60  ;;  %1087 = vmatprep.subr.msk.bf16.mxu0 %vm1790_vm6, %v1503_v2  ;;  %v1533_v13 = vsel %vm1791_vm10, %v1503_v2, 0  ;;  %v190_v14 = vsel %vm184_vm2, %v1497_v1, %v181_v9  ;;  %vm1792_vm15 = vcmp.eq.s32.totalorder %v1332_v6, 2  ;;  %s1544_s22 = sld [smem:[#allocation2 + %s701_s30]]  ;;  %s719_s26 = sadd.s32 24, %s1313_s27 }
  0x40   : > { %v191_v15 = vsel %vm1792_vm15, %v1497_v1, %v182_v10  ;;  %v565_v16 = vstv %s1451_s24  ;;  %v199_v17 = vsel %vm193_vm3, %v1512_v8, %v190_v14  ;;  %v571_v23 = vstv %s1461_s29  ;;  %s1569_s23 = sld [smem:[#allocation2 + %s707_s6]]  ;;  %v216_v14 = vld [vmem:[%s1419_s17 + $0x20] sm:$0xff]  ;;  %s148_s28 = sand.u32 1, %s1217_s10  }
  0x41   : > { %994 = vmatmul.mubr.msk.bf16.vlgmr.msra.gmra.mrb[0].mxu1 %vm269_vm9, %v266_v59  ;;  %v200_v18 = vsel %vm194_vm12, %v1512_v8, %v191_v15  ;;  %v566_v19 = vsel %vm166_vm0, %v565_v16, 0.0  ;;  %v567_v20 = vsel %vm167_vm5, %v565_v16, 0.0  ;;  %v208_v21 = vsel %vm202_vm4, %v1524_v11, %v199_v17  ;;  %s1587_s27 = sld [smem:[#allocation2 + %s713_s25]]  ;;  %s930_s29 = sshll.u32 %s148_s28, 6 }
  0x42   : > { %v209_v22 = vsel %vm203_vm14, %v1524_v11, %v200_v18  ;;  %v577_v24 = vstv %s1471_s3  ;;  %1016 = vmatpush3.bf16.msra.mxu0 %v1533_v13  ;;  %v572_v28 = vsel %vm175_vm1, %v571_v23, %v566_v19  ;;  %v573_v29 = vsel %vm176_vm7, %v571_v23, %v567_v20  ;;  %s1589_s24 = sld [smem:[#allocation2 + %s719_s26]]  ;;  %v599_v19 = vld [vmem:[%s1419_s17 + $0x33] sm:$0xff]  ;;  %v600_v20 = vld [vmem:[%s1419_s17 + $0x3b] sm:$0xff]  ;;  %s958_s4 = sshll.u32 %s1267_s13, 10 }
  0x43   : > { %v211_v27 = vpack.c.bf16 %v209_v22, %v208_v21  ;;  %v583_v30 = vstv %s1484_s7  ;;  %v578_v31 = vsel %vm184_vm2, %v577_v24, %v572_v28  ;;  %v579_v32 = vsel %vm1792_vm15, %v577_v24, %v573_v29  ;;  %s1730_s8 = scalar_lea.hbm %s1782_s2, %s958_s4  ;;  %s1739_s13 = scalar_lea.sflag [#allocation3], %s148_s28 }
  0x44   : > { %v589_v33 = vstv %s1499_s14  ;;  %vm1793_vm6 = vcmp.eq.s32.totalorder %v1334_v7, 0  ;;  %v584_v38 = vsel %vm193_vm3, %v583_v30, %v578_v31  ;;  %v585_v39 = vsel %vm194_vm12, %v583_v30, %v579_v32  ;;  %s1228_s16 = smov [#allocation5]  }
  0x45   : > { %v568_v34 = vsel %vm1793_vm6, %v565_v16, 0.0  ;;  %1001 = vmatprep.subr.bf16.mxu1 %v211_v27  ;;  %v267_v41 = vpack.c.bf16 %v262_v26, %v261_v25  ;;  %1018 = vmatmul.mubr.msk.bf16.vlgmr.msra.gmra.mrb[0].mxu0 %vm269_vm9, %v472_v12  ;;  %v590_v45 = vsel %vm202_vm4, %v589_v33, %v584_v38  ;;  %v591_v46 = vsel %vm203_vm14, %v589_v33, %v585_v39  ;;  %vm1794_vm10 = vmmov %vm1793_vm6  ;;  %v215_v12 = vld [vmem:[%s1419_s17 + $0x18] sm:$0xff]  ;;  %v217_v25 = vld [vmem:[%s1419_s17 + $0x30] sm:$0xff]  ;;  %s1163_s30 = sshll.u32 %s1228_s16, 4  ;;  %s1164_s30 = int_to_ptr.vmem [resolvable:$false] %s1163_s30 }
  0x46   : > { %v574_v40 = vsel %vm177_vm8, %v571_v23, %v568_v34  ;;  %1002 = vmatpush3.bf16.msra.mxu1 %v211_v27  ;;  %v174_v48 = vsel %vm1794_vm10, %v1491_v63, 0.0  ;;  %v593_v49 = vpack.c.bf16 %v591_v46, %v590_v45  ;;  %v268_v51 = vpack.c.bf16 %v264_v36, %v263_v35  ;;  %v218_v26 = vld [vmem:[%s1419_s17 + $0x38] sm:$0xff]  ;;  %v601_v34 = vld [vmem:[%s1419_s17 + $0x4b] sm:$0xff]  ;;  %s1165_s6 = scalar_lea.vmem %s1164_s30, 2048 }
  0x47   : > { %v580_v47 = vsel %vm186_vm11, %v577_v24, %v574_v40  ;;  %997 = vmatprep.mubr.msk.bf16.mxu1 %vm269_vm9, %v267_v41  ;;  %v183_v52 = vsel %vm177_vm8, %v1494_v0, %v174_v48  ;;  %vm1795_vm15 = vcmp.eq.s32.totalorder %v1334_v7, 4  ;;  %v603_v55 = vpack.c.bf16 %v596_v42, %v595_v37  ;;  %v219_v36 = vld [vmem:[%s1419_s17 + $0x48] sm:$0xff]  ;;  %v220_v37 = vld [vmem:[%s1419_s17 + $0x50] sm:$0xff]  ;;  %v468_v41 = vld [vmem:[%s1419_s17 + $0x3a] sm:$0xff] }
  0x48   : > { %v586_v50 = vsel %vm195_vm13, %v583_v30, %v580_v47  ;;  %v192_v54 = vsel %vm186_vm11, %v1497_v1, %v183_v52  ;;  %v604_v57 = vpack.c.bf16 %v1602_v44, %v1599_v43  ;;  %1025 = vmatprep.subr.bf16.mxu0 %v593_v49  ;;  %v697_v60 = vstv %s1542_s21  ;;  %vm1796_vm6 = vmmov %vm1795_vm15  ;;  %v602_v38 = vld [vmem:[%s1419_s17 + $0x53] sm:$0xff]  ;;  %v730_v48 = vld [vmem:[%s1419_s17 + $0x24] sm:$0xff] }
  0x49   : > { %v592_v53 = vsel %vm1795_vm15, %v589_v33, %v586_v50  ;;  %998 = vmatmul.mubr.msk.bf16.gmra.mrb[4].mxu1 %vm269_vm9, %v268_v51  ;;  %v201_v59 = vsel %vm195_vm13, %v1512_v8, %v192_v54  ;;  %v703_v61 = vstv %s1544_s22  ;;  %1026 = vmatpush3.bf16.msra.mxu0 %v593_v49  ;;  %v698_v63 = vsel %vm166_vm0, %v697_v60, 0.0  ;;  %v467_v40 = vld [vmem:[%s1419_s17 + $0x32] sm:$0xff]  ;;  %v732_v50 = vld [vmem:[%s1419_s17 + $0x3c] sm:$0xff] }
  0x4a   : > { %v594_v58 = vpack.c.bf16 %v592_v53, %v592_v53  ;;  %v210_v62 = vsel %vm1796_vm6, %v1524_v11, %v201_v59  ;;  %1029 = vmatprep.mubr.msk.bf16.mxu0 %vm269_vm9, %v603_v55  ;;  %v699_v0 = vsel %vm167_vm5, %v697_v60, 0.0  ;;  %v709_v1 = vstv %s1569_s23  ;;  %v728_v43 = vld [vmem:[%s1419_s17 + $0xc] sm:$0xff]  ;;  %v731_v49 = vld [vmem:[%s1419_s17 + $0x34] sm:$0xff] }
  0x4b   : > { %vm1797_vm10 = vcmask 1041408   ;;  %v212_v9 = vpack.c.bf16 %v210_v62, %v210_v62  ;;  %v704_v10 = vsel %vm175_vm1, %v703_v61, %v698_v63  ;;  %v705_v11 = vsel %vm176_vm7, %v703_v61, %v699_v0  ;;  %v470_v52 = vld [vmem:[%s1419_s17 + $0x52] sm:$0xff] }
  0x4c   : > { %1089 = vmatprep.subr.msk.bf16.mxu0 %vm1797_vm10, %v594_v58  ;;  %vm1798_vm15 = vmmov %vm1797_vm10  ;;  %v710_v15 = vsel %vm184_vm2, %v709_v1, %v704_v10  ;;  %vm1799_vm0 = vcmp.eq.s32.totalorder %v1332_v6, 2  ;;  %v715_v17 = vstv %s1587_s27  ;;  %v721_v18 = vstv %s1589_s24  ;;  %v733_v55 = vld [vmem:[%s1419_s17 + $0x4c] sm:$0xff] }
  0x4d   : > { %v620_v8 = vsel %vm1798_vm15, %v594_v58, 0  ;;  %v711_v16 = vsel %vm1799_vm0, %v709_v1, %v705_v11  ;;  %vm1800_vm5 = vmmov %vm1797_vm10  ;;  %v716_v22 = vsel %vm193_vm3, %v715_v17, %v710_v15  ;;  %v221_v24 = vpack.c.bf16 %v214_v4, %v213_v3 }
  0x4e   : > { %1086 = vmatprep.subr.msk.bf16.mxu1 %vm1800_vm5, %v212_v9  ;;  %vm1801_vm6 = vmmov %vm1800_vm5  ;;  %v717_v23 = vsel %vm194_vm12, %v715_v17, %v711_v16  ;;  %1028 = vmatpush3.bf16.msra.mxu0 %v620_v8  ;;  %v722_v27 = vsel %vm202_vm4, %v721_v18, %v716_v22  ;;  %v222_v29 = vpack.c.bf16 %v216_v14, %v215_v12  ;;  %vm1802_vm1 = vcmp.eq.s32.totalorder %v1334_v7, 0 }
  0x4f   : > { %v364_v21 = vsel %vm1801_vm6, %v212_v9, 0  ;;  %v723_v28 = vsel %vm203_vm14, %v721_v18, %v717_v23  ;;  %v700_v30 = vsel %vm1802_vm1, %v697_v60, 0.0  ;;  %1005 = vmatprep.mubr.msk.bf16.mxu1 %vm269_vm9, %v221_v24  ;;  %v605_v32 = vpack.c.bf16 %v600_v20, %v599_v19  ;;  %vm1804_vm3 = vmmov %vm1800_vm5 }
  0x50   : > { %1004 = vmatpush3.bf16.msra.mxu1 %v364_v21  ;;  %v725_v31 = vpack.c.bf16 %v723_v28, %v722_v27  ;;  %v706_v5 = vsel %vm177_vm8, %v703_v61, %v700_v30  ;;  %v223_v6 = vpack.c.bf16 %v218_v26, %v217_v25  ;;  %vm1803_vm2 = vcmp.eq.s32.totalorder %v1334_v7, 4  ;;  %vm1805_vm4 = vmmov %vm1804_vm3 }
  0x51   : > { %1049 = vmatprep.subr.bf16.mxu1 %v1474_v56  ;;  %v712_v33 = vsel %vm186_vm11, %v709_v1, %v706_v5  ;;  %1030 = vmatmul.mubr.msk.bf16.vlgmr.msra.gmra.mrb[0].mxu0 %vm269_vm9, %v604_v57  ;;  %v224_v44 = vpack.c.bf16 %v220_v37, %v219_v36  ;;  %v606_v45 = vpack.c.bf16 %v602_v38, %v601_v34  ;;  %vm1806_vm7 = vmmov %vm1804_vm3  ;;  %v734_v57 = vld [vmem:[%s1419_s17 + $0x54] sm:$0xff]  ;;  %vm827_vm8 = vcmask 130048  }
  0x52   : > { %1037 = vmatprep.subr.bf16.mxu0 %v725_v31  ;;  %v718_v35 = vsel %vm195_vm13, %v715_v17, %v712_v33  ;;  %1033 = vmatprep.mubr.msk.bf16.mxu0 %vm269_vm9, %v605_v32  ;;  %v473_v46 = vpack.c.bf16 %v468_v41, %v467_v40  ;;  %v737_v53 = vpack.c.bf16 %v732_v50, %v731_v49 }
  0x53   : > { %1006 = vmatmul.mubr.msk.bf16.vlgmr.msra.gmra.mrb[0].mxu1 %vm269_vm9, %v222_v29  ;;  %1038 = vmatpush3.bf16.msra.mxu0 %v725_v31  ;;  %v724_v39 = vsel %vm1803_vm2, %v721_v18, %v718_v35  ;;  %v738_v58 = vpack.c.bf16 %v734_v57, %v733_v55 }
  0x54   : > { %1051 = vmatpush3.bf16.msra.mxu1 %v1474_v56  ;;  %v726_v42 = vpack.c.bf16 %v724_v39, %v724_v39  ;;  %1009 = vmatprep.mubr.msk.bf16.mxu1 %vm269_vm9, %v223_v6  ;;  %v727_v56 = vld [vmem:[%s1419_s17 + $0x4] sm:$0xff] }
  0x55   : > { %1088 = vmatprep.subr.msk.bf16.mxu1 %vm1804_vm3, %v1503_v2  ;;  %v735_v47 = vpack.c.bf16 %v728_v43, %v727_v56  ;;  %v729_v2 = vld [vmem:[%s1419_s17 + $0x1c] sm:$0xff] }
  0x56   : > { %1090 = vmatprep.subr.msk.bf16.mxu0 %vm1805_vm4, %v726_v42  ;;  %v752_v7 = vsel %vm1806_vm7, %v726_v42, 0  ;;  %v736_v51 = vpack.c.bf16 %v730_v48, %v729_v2 }
  0x57   : > { %1040 = vmatpush3.bf16.msra.mxu0 %v752_v7 }
  0x58   : > { %1052 = vmatpush3.bf16.msra.mxu1 %v1533_v13  ;;  %v469_v13 = vld [vmem:[%s1419_s17 + $0x4a] sm:$0xff]  ;;  %s150_s17 = scalar_lea.vmem [#allocation5], %s930_s29 }
  0x59   : > { %1034 = vmatmul.mubr.msk.bf16.gmra.mrb[4].mxu0 %vm269_vm9, %v606_v45  ;;  %v474_v54 = vpack.c.bf16 %v470_v52, %v469_v13  ;;  %s850_s3 = sshll.u32 %s150_s17, 4  ;;  %s1732_s3 = int_to_ptr.vmem [resolvable:$true] %s850_s3 }
  0x5a   : > { %1041 = vmatprep.mubr.msk.bf16.mxu0 %vm269_vm9, %v735_v47  ;;  %s1159_s14 = scalar_lea.vmem %s1732_s3, 1024  ;;  %p1166_p13 = scmp.lt.s32.totalorder %s1732_s3, %s1164_s30 }
  0x5b   : > { %1010 = vmatmul.mubr.msk.bf16.gmra.mrb[4].mxu1 %vm269_vm9, %v224_v44  ;;  %p1160_p9 = scmp.ne.s32.totalorder %s1732_s3, %s1159_s14  ;;  %p1167_p0 = scmp.lt.s32.totalorder %s1165_s6, %s1159_s14 }
  0x5c   : > { %1021 = vmatprep.mubr.msk.bf16.mxu1 %vm269_vm9, %v473_v46 }
  0x5d   : > { %p1161_p10 = pnand %p1160_p9, %p1284_p5  ;;  %p1168_p1 = por %p1167_p0, %p1166_p13 }
  0x5f   : > { %p1162_p12 = pneg %p1161_p10 }
  0x61   : > { %1042 = vmatmul.mubr.msk.bf16.vlgmr.msra.gmra.mrb[0].mxu0 %vm269_vm9, %v736_v51  ;;  %p1169_p2 = pnand %p1168_p1, %p1162_p12 }
  0x62   : > { %1045 = vmatprep.mubr.msk.bf16.mxu0 %vm269_vm9, %v737_v53 }
  0x67   : > { %1022 = vmatmul.mubr.msk.bf16.vlgmr.msra.gmra.mrb[4].mxu1 %vm269_vm9, %v474_v54 }
  0x69   : > { %1046 = vmatmul.mubr.msk.bf16.gmra.mrb[4].mxu0 %vm269_vm9, %v738_v58 }
 0x126   : > { %v1007_v59 = vpop.f32.mrb[0].mxu1 }
 0x127   : > { %v400_v60 = vpop.f32.mrb[1].mxu1 }
 0x128   : > { %v1008_v61 = vpop.f32.mrb[2].mxu1 }
 0x129   : > { %v403_v62 = vpop.f32.mrb[3].mxu1 }
 0x134   : > { %v1043_v63 = vpop.f32.mrb[0].mxu0 }
 0x135   : > { %v1053_v0 = vadd.f32 %v1043_v63, %v1007_v59  ;;  %v788_v1 = vpop.f32.mrb[1].mxu0 }
 0x136   : > { %v1054_v3 = vadd.f32 %v788_v1, %v400_v60  ;;  %v1044_v4 = vpop.f32.mrb[2].mxu0 }
 0x137   : > { %830 = vst.msk [vmem:[%s150_s17 + $0x10] sm:$0xff] %vm827_vm8, %v1053_v0  ;;  %v1055_v8 = vadd.f32 %v1044_v4, %v1008_v61  ;;  %v791_v9 = vpop.f32.mrb[3].mxu0 }
 0x138   : > { %828 = vst.msk [vmem:[%s150_s17] sm:$0xff] %vm827_vm8, %v1054_v3  ;;  %v1056_v11 = vadd.f32 %v791_v9, %v403_v62 }
 0x139   : > { %831 = vst.msk [vmem:[%s150_s17 + $0x18] sm:$0xff] %vm827_vm8, %v1055_v8 }
 0x13a   : > { %v1023_v10 = vpop.f32.mrb[4].mxu1  ;;  %829 = vst.msk [vmem:[%s150_s17 + $0x8] sm:$0xff] %vm827_vm8, %v1056_v11 }
 0x13b   : > { %v540_v12 = vpop.f32.mrb[5].mxu1 }
 0x13c   : > { %v1024_v14 = vpop.f32.mrb[6].mxu1  ;;  %v1047_v16 = vpop.f32.mrb[4].mxu0 }
 0x13d   : > { %v543_v15 = vpop.f32.mrb[7].mxu1  ;;  %v1057_v17 = vadd.f32 %v1047_v16, %v1023_v10  ;;  %v804_v18 = vpop.f32.mrb[5].mxu0 }
 0x13e   : > { %v1058_v19 = vadd.f32 %v804_v18, %v540_v12  ;;  %v1048_v20 = vpop.f32.mrb[6].mxu0 }
 0x13f   : > { %834 = vst.msk [vmem:[%s150_s17 + $0x30] sm:$0xff] %vm827_vm8, %v1057_v17  ;;  %v1059_v21 = vadd.f32 %v1048_v20, %v1024_v14  ;;  %v807_v22 = vpop.f32.mrb[7].mxu0 }
 0x140   : > { %832 = vst.msk [vmem:[%s150_s17 + $0x20] sm:$0xff] %vm827_vm8, %v1058_v19  ;;  %v1060_v23 = vadd.f32 %v807_v22, %v543_v15 }
 0x141   : > { %835 = vst.msk [vmem:[%s150_s17 + $0x38] sm:$0xff] %vm827_vm8, %v1059_v21 }
 0x142   : > { %833 = vst.msk [vmem:[%s150_s17 + $0x28] sm:$0xff] %vm827_vm8, %v1060_v23 }
 0x143   : > { %1172 = shalt.err (!%p1169_p2)
}
 0x144   : > { %s1173_s21 = scalar_lea.hbm %s1730_s8, 1024  ;;  %s1177_s26 = scalar_lea.hbm %s1782_s2, 2048 }
 0x145   : > { %p1174_p3 = scmp.ne.s32.totalorder %s1730_s8, %s1173_s21  ;;  %p1178_p8 = scmp.lt.u32.totalorder %s1730_s8, %s1782_s2 }
 0x146   : > { %p1179_p11 = scmp.lt.u32.totalorder %s1177_s26, %s1173_s21  ;;  %p1181_p10 = scmp.lt.u32.totalorder %s1173_s21, %s1730_s8 }
 0x147   : > { %p1175_p4 = pnand %p1174_p3, %p1284_p5 }
 0x148   : > { %p1180_p9 = por %p1179_p11, %p1178_p8 }
 0x149   : > { %p1176_p7 = pneg %p1175_p4 }
 0x14a   : > { %p1182_p12 = por %p1181_p10, %p1180_p9 }
 0x14c   : > { %p1183_p13 = pnand %p1182_p12, %p1176_p7 }
 0x14e   : > { %1186 = shalt.err (!%p1183_p13)
}
 0x14f   : > { %s1229_s24 = smov 128   ;;  %s1230_s28 = smov 8  }
 0x150   : > { %1096 = dma.vmem_to_hbm [thread:$0]  (%p1284_p5), %s1732_s3, 1024, %s1730_s8, %s1739_s13, %s1229_s24, %s1229_s24, %s1230_s28  }
 0x151 PF: > { %p1108_p0 = scmp.ge.s32.totalorder %s1225_s12, 2  ;;  %s865_s29 = sand.u32 1, %s1213_s9  }
 0x152   : > { %s866_s17 = scalar_lea.sflag [#allocation3], %s865_s29 }
 0x153   : > { %p1103_p1 = pnand %p1108_p0, %p1288_p6 }
 0x155   : > { %1208 = dma.done.wait (!%p1103_p1), %s866_s17, 1024  }
 0x156   : > { %1210 = vsyncadd (!%p1103_p1), %s866_s17, 4294966272  ;;  %p13_p2 = scmp.ge.s32.totalorder %s1271_s15, 4   ;;  %s1807_s9 = smov %s1217_s10 }
 0x157   : > { %s1808_s10 = smov %s1221_s11  ;;  %s1809_s11 = smov %s1282_s18 }
 0x158   : > { %s1810_s12 = smov %s1271_s15  ;;  %15 = sbr.rel (!%p13_p2) target bundleno = 4 (0x4), region = 68 }
 0x15f   :  { %871 = vsyncpa [#allocation3], 1 }
 0x160   :  { %873 = vsyncpa [#allocation3 + $0x1], 1 }
 0x161   :  { %874 = vsyncpa [#allocation4], 1 }
 0x162   :  { %876 = vsyncpa [#allocation4 + $0x1], 1 }

</bundles_post_ra>
